<compile_context>
chip_gen: v7x
topology: tpu7x:2x2x1
jax: 0.10.0
libtpu: 0.0.40
codegen_flags: <defaults>
</compile_context>

<pallas_src>
import jax
import jax.numpy as jnp
from jax.experimental import pallas as pl
from jax.experimental.pallas import tpu as pltpu

_EPS = 1e-5


# ---------------------------------------------------------------------------
# Pallas kernels (channels on sublanes, B*spatial on lanes)
# ---------------------------------------------------------------------------
def _prefft_kernel(p_ref, x_ref, outl_ref, l2g_ref, y1_ref):
    """Pre-FFT fused kernel.

    x_ref: (B, 4, HW) f32; rows 0-1 = x_l channels, rows 2-3 = x_g channels.
    p_ref: SMEM f32[17]:
      [0:8]   w_toL_eff[c, o] = concat(w_l2l, w_g2l)[c, o] * scale_l[o]   (idx c*2+o)
      [8:10]  bias_l[o]
      [10:14] w_l2g_eff[c, o] = w_l2g[c, o] * scale_g[o]                  (idx 10+c*2+o)
      [14:16] w1_eff[c, 0]   = st_w1[c, 0] * s1[0]
      [16]    b1[0]
    Outputs: out_xl (B,2,HW), l2g partial (B,2,HW), y1 (B,1,HW).
    """
    xs = [x_ref[:, c:c + 1, :] for c in range(4)]          # each (B,1,HW)

    # out_xl = BN_l(convl2l(x_l) + convg2l(x_g))
    for o in range(2):
        y = xs[0] * p_ref[o]
        for c in range(1, 4):
            y = y + xs[c] * p_ref[c * 2 + o]
        outl_ref[:, o:o + 1, :] = y + p_ref[8 + o]

    # convl2g(x_l), pre-scaled by BN_g scale (bias added post-FFT)
    for o in range(2):
        l2g_ref[:, o:o + 1, :] = xs[0] * p_ref[10 + o] + xs[1] * p_ref[12 + o]

    # y1 = relu(BN1(conv1(x_g)))
    y = xs[2] * p_ref[14] + xs[3] * p_ref[15] + p_ref[16]
    y1_ref[...] = jnp.maximum(y, 0.0)


def _fu_kernel(p_ref, f_ref, o_ref):
    """Spectral-domain 1x1 conv + BN + ReLU of the FourierUnit.

    f_ref: (B, 2, H*Wf) f32, channel 0 = real, 1 = imag.
    p_ref: SMEM f32[6]: wfu_eff[c, o] at c*2+o (folded with BN scale),
           bfu[o] at 4+o.
    """
    re = f_ref[:, 0:1, :]
    im = f_ref[:, 1:2, :]
    for o in range(2):
        y = re * p_ref[o] + im * p_ref[2 + o] + p_ref[4 + o]
        o_ref[:, o:o + 1, :] = jnp.maximum(y, 0.0)


def _postfft_kernel(p_ref, y1_ref, fu_ref, l2g_ref, outl_ref, o_ref):
    """Post-FFT fused kernel: conv2(y1 + fu_out) + l2g partial + BN_g bias,
    and assembly of the final (B, 4, HW) output (local half passed through).

    p_ref: SMEM f32[4]: w2_eff[0, o] = st_w2[0, o]*scale_g[o] at o,
           bias_g[o] at 2+o.
    """
    o_ref[:, 0:2, :] = outl_ref[...]                        # local half
    s = y1_ref[...] + fu_ref[...]                           # (B,1,HW)
    for o in range(2):
        o_ref[:, 2 + o:3 + o, :] = (s * p_ref[o]
                                    + l2g_ref[:, o:o + 1, :]
                                    + p_ref[2 + o])


# ---------------------------------------------------------------------------
# Helpers
# ---------------------------------------------------------------------------
def bn_affine(params):
    gamma, beta, mean, var = params
    scale = gamma / jnp.sqrt(var + _EPS)
    bias = beta - mean * scale
    return scale, bias


_SMEM_SPEC = pl.BlockSpec(memory_space=pltpu.MemorySpace.SMEM)
_VMEM_SPEC = pl.BlockSpec(memory_space=pltpu.MemorySpace.VMEM)


# ---------------------------------------------------------------------------
# FFC_BN_ACT forward (Pallas path)
# ---------------------------------------------------------------------------
def ffc_bn_act_forward(x, params):
    B, C, H, W = x.shape
    assert C == 4, "kernel is specialized for in_channels=out_channels=4"
    HW = H * W
    x3 = x.reshape(B, C, HW).astype(jnp.float32)            # (B, C, HW) slab

    # Fold BN scales into the weights; keep per-channel biases only.
    scale_l, bias_l = bn_affine(params["bn_l"])
    scale_g, bias_g = bn_affine(params["bn_g"])
    s1, b1 = bn_affine(params["st_bn1"])
    sfu, bfu = bn_affine(params["st_bnfu"])

    w_toL = jnp.concatenate([params["w_l2l"], params["w_g2l"]], axis=0)  # (4,2)
    w_toL_eff = w_toL * scale_l[None, :]
    w_l2g_eff = params["w_l2g"] * scale_g[None, :]                       # (2,2)
    w1_eff = params["st_w1"] * s1[None, :]                               # (2,1)
    wfu_eff = params["st_wfu"] * sfu[None, :]                            # (2,2)
    w2_eff = params["st_w2"] * scale_g[None, :]                          # (1,2)

    pA = jnp.concatenate([w_toL_eff.reshape(-1), bias_l,
                          w_l2g_eff.reshape(-1), w1_eff.reshape(-1),
                          b1]).astype(jnp.float32)                       # (17,)
    pF = jnp.concatenate([wfu_eff.reshape(-1), bfu]).astype(jnp.float32)  # (6,)
    pB = jnp.concatenate([w2_eff.reshape(-1), bias_g]).astype(jnp.float32)  # (4,)

    # --- launch 1: pre-FFT fused kernel ---
    outl3, l2g3, y13 = pl.pallas_call(
        _prefft_kernel,
        out_shape=(
            jax.ShapeDtypeStruct((B, 2, HW), jnp.float32),
            jax.ShapeDtypeStruct((B, 2, HW), jnp.float32),
            jax.ShapeDtypeStruct((B, 1, HW), jnp.float32),
        ),
        in_specs=[_SMEM_SPEC, _VMEM_SPEC],
        out_specs=(_VMEM_SPEC, _VMEM_SPEC, _VMEM_SPEC),
    )(pA, x3)

    # --- FourierUnit FFT (XLA) ---
    # TODO(synk): rfft2/irfft2 have no Pallas primitive; they run in jnp.fft.
    y1 = y13.reshape(B, 1, H, W)
    ff = jnp.fft.rfft2(y1, norm="ortho")                     # (B,1,H,Wf) cplx
    Wf = ff.shape[-1]
    ff3 = jnp.concatenate([ff.real, ff.imag], axis=1).reshape(B, 2, H * Wf)

    # --- launch 2: spectral-domain conv + BN + ReLU ---
    fu3 = pl.pallas_call(
        _fu_kernel,
        out_shape=jax.ShapeDtypeStruct((B, 2, H * Wf), jnp.float32),
        in_specs=[_SMEM_SPEC, _VMEM_SPEC],
        out_specs=_VMEM_SPEC,
    )(pF, ff3)

    fu_ri = fu3.reshape(B, 2, H, Wf)
    fu_c = fu_ri[:, 0:1] + 1j * fu_ri[:, 1:2]                # (B,1,H,Wf)
    fu_out = jnp.fft.irfft2(fu_c, s=(H, W), norm="ortho")    # (B,1,H,W)
    fu3d = fu_out.reshape(B, 1, HW).astype(jnp.float32)

    # --- launch 3: post-FFT fused kernel (also assembles final output) ---
    out3 = pl.pallas_call(
        _postfft_kernel,
        out_shape=jax.ShapeDtypeStruct((B, 4, HW), jnp.float32),
        in_specs=[_SMEM_SPEC, _VMEM_SPEC, _VMEM_SPEC, _VMEM_SPEC, _VMEM_SPEC],
        out_specs=_VMEM_SPEC,
    )(pB, y13, fu3d, l2g3, outl3)

    return out3.reshape(B, C, H, W)


# ---------------------------------------------------------------------------
# Pure-JAX reference (NCHW, einsum) for validation
# ---------------------------------------------------------------------------
def _conv1x1_ref(x, w):                                   # x: (B,C,H,W), w: (Cin,Cout)
    return jnp.einsum("bchw,cd->bdhw", x, w)


def _bn_ref(x, p):
    g, b, m, v = p
    return ((x - m[None, :, None, None])
            / jnp.sqrt(v[None, :, None, None] + _EPS)
            * g[None, :, None, None] + b[None, :, None, None])


def reference_forward(x, params):
    B, C, H, W = x.shape
    x_l, x_g = x[:, :C // 2], x[:, C // 2:]
    out_xl = _conv1x1_ref(x_l, params["w_l2l"]) + _conv1x1_ref(x_g, params["w_g2l"])
    y1 = jax.nn.relu(_bn_ref(_conv1x1_ref(x_g, params["st_w1"]), params["st_bn1"]))
    ff = jnp.fft.rfft2(y1, norm="ortho")
    ff_ri = jnp.stack([ff.real, ff.imag], axis=2).reshape(B, -1, H, ff.shape[-1])
    ff_ri = jax.nn.relu(_bn_ref(_conv1x1_ref(ff_ri, params["st_wfu"]),
                                params["st_bnfu"]))
    ff_ri = ff_ri.reshape(B, -1, 2, H, ff.shape[-1])
    fu_c = ff_ri[:, :, 0] + 1j * ff_ri[:, :, 1]
    fu_out = jnp.fft.irfft2(fu_c, s=(H, W), norm="ortho")
    g2g = _conv1x1_ref(y1 + fu_out, params["st_w2"])
    out_xg = _conv1x1_ref(x_l, params["w_l2g"]) + g2g
    out_xl = _bn_ref(out_xl, params["bn_l"])
    out_xg = _bn_ref(out_xg, params["bn_g"])
    return jnp.concatenate([out_xl, out_xg], axis=1)


# ---------------------------------------------------------------------------
# Deterministic parameter construction
# ---------------------------------------------------------------------------
def make_params(key, in_channels=4, out_channels=4):
    in_cl = in_channels - in_channels // 2      # 2
    in_cg = in_channels // 2                    # 2
    out_cl = out_channels - out_channels // 2   # 2
    out_cg = out_channels // 2                  # 2
    cg_half = out_cg // 2                       # 1

    ks = jax.random.split(key, 16)

    def w(k, cin, cout):                        # stored as (Cin, Cout)
        return 0.3 * jax.random.normal(k, (cin, cout), jnp.float32)

    def bn(k, c):
        k1, k2, k3, k4 = jax.random.split(k, 4)
        gamma = 1.0 + 0.1 * jax.random.normal(k1, (c,), jnp.float32)
        beta = 0.1 * jax.random.normal(k2, (c,), jnp.float32)
        mean = 0.1 * jax.random.normal(k3, (c,), jnp.float32)
        var = 0.5 + jax.random.uniform(k4, (c,), jnp.float32)
        return (gamma, beta, mean, var)

    return {
        "w_l2l": w(ks[0], in_cl, out_cl),
        "w_l2g": w(ks[1], in_cl, out_cg),
        "w_g2l": w(ks[2], in_cg, out_cl),
        # SpectralTransform
        "st_w1": w(ks[3], in_cg, cg_half),
        "st_bn1": bn(ks[4], cg_half),
        "st_wfu": w(ks[5], cg_half * 2, cg_half * 2),
        "st_bnfu": bn(ks[6], cg_half * 2),
        "st_w2": w(ks[7], cg_half, out_cg),
        # FFC_BN_ACT norms
        "bn_l": bn(ks[8], out_cl),
        "bn_g": bn(ks[9], out_cg),
    }


# ---------------------------------------------------------------------------
if __name__ == "__main__":
    key = jax.random.PRNGKey(0)
    kx, kp = jax.random.split(key)

    B, C, H, W = 2, 4, 16, 16
    x = jax.random.normal(kx, (B, C, H, W), jnp.float32)   # NCHW like PyTorch
    params = make_params(kp, in_channels=C, out_channels=C)

    out = jax.jit(ffc_bn_act_forward)(x, params)
    out = jax.block_until_ready(out)

    ref = jax.block_until_ready(reference_forward(x, params))
    assert out.shape == (B, C, H, W), out.shape
    assert jnp.allclose(out, ref, rtol=2e-4, atol=3e-5), (
        float(jnp.max(jnp.abs(out - ref))))

    print("KERNEL_OK")
</pallas_src>

<mosaic_0001>
module attributes {stable_mosaic.version = 11 : i64} {
  func.func @_prefft_kernel(%arg0: memref<17xf32, #tpu.memory_space<smem>>, %arg1: memref<2x4x256xf32, #tpu.memory_space<vmem>>, %arg2: memref<2x2x256xf32, #tpu.memory_space<vmem>>, %arg3: memref<2x2x256xf32, #tpu.memory_space<vmem>>, %arg4: memref<2x1x256xf32, #tpu.memory_space<vmem>>) attributes {dimension_semantics = [], scalar_prefetch = 0 : i64, scratch_operands = 0 : i64, tpu.core_type = #tpu.core_type<tc>} {
    %c0 = arith.constant 0 : index
    %c0_0 = arith.constant 0 : index
    %c0_1 = arith.constant 0 : index
    %0 = vector.load %arg1[%c0, %c0_0, %c0_1] : memref<2x4x256xf32, #tpu.memory_space<vmem>>, vector<2x1x256xf32>
    %c0_2 = arith.constant 0 : index
    %c1 = arith.constant 1 : index
    %c0_3 = arith.constant 0 : index
    %1 = vector.load %arg1[%c0_2, %c1, %c0_3] : memref<2x4x256xf32, #tpu.memory_space<vmem>>, vector<2x1x256xf32>
    %c0_4 = arith.constant 0 : index
    %c2 = arith.constant 2 : index
    %c0_5 = arith.constant 0 : index
    %2 = vector.load %arg1[%c0_4, %c2, %c0_5] : memref<2x4x256xf32, #tpu.memory_space<vmem>>, vector<2x1x256xf32>
    %c0_6 = arith.constant 0 : index
    %c3 = arith.constant 3 : index
    %c0_7 = arith.constant 0 : index
    %3 = vector.load %arg1[%c0_6, %c3, %c0_7] : memref<2x4x256xf32, #tpu.memory_space<vmem>>, vector<2x1x256xf32>
    %c0_8 = arith.constant 0 : index
    %4 = memref.load %arg0[%c0_8] : memref<17xf32, #tpu.memory_space<smem>>
    %5 = vector.broadcast %4 : f32 to vector<2x1x256xf32>
    %6 = arith.mulf %0, %5 : vector<2x1x256xf32>
    %c2_9 = arith.constant 2 : index
    %7 = memref.load %arg0[%c2_9] : memref<17xf32, #tpu.memory_space<smem>>
    %8 = vector.broadcast %7 : f32 to vector<2x1x256xf32>
    %9 = arith.mulf %1, %8 : vector<2x1x256xf32>
    %10 = arith.addf %6, %9 : vector<2x1x256xf32>
    %c4 = arith.constant 4 : index
    %11 = memref.load %arg0[%c4] : memref<17xf32, #tpu.memory_space<smem>>
    %12 = vector.broadcast %11 : f32 to vector<2x1x256xf32>
    %13 = arith.mulf %2, %12 : vector<2x1x256xf32>
    %14 = arith.addf %10, %13 : vector<2x1x256xf32>
    %c6 = arith.constant 6 : index
    %15 = memref.load %arg0[%c6] : memref<17xf32, #tpu.memory_space<smem>>
    %16 = vector.broadcast %15 : f32 to vector<2x1x256xf32>
    %17 = arith.mulf %3, %16 : vector<2x1x256xf32>
    %18 = arith.addf %14, %17 : vector<2x1x256xf32>
    %c8 = arith.constant 8 : index
    %19 = memref.load %arg0[%c8] : memref<17xf32, #tpu.memory_space<smem>>
    %20 = vector.broadcast %19 : f32 to vector<2x1x256xf32>
    %21 = arith.addf %18, %20 : vector<2x1x256xf32>
    %c0_10 = arith.constant 0 : index
    %c0_11 = arith.constant 0 : index
    %c0_12 = arith.constant 0 : index
    %22 = vector.load %arg2[%c0_10, %c0_11, %c0_12] : memref<2x2x256xf32, #tpu.memory_space<vmem>>, vector<2x1x256xf32>
    tpu.vector_store %arg2[%c0_10, %c0_11, %c0_12], %21 {strides = array<i32>} : memref<2x2x256xf32, #tpu.memory_space<vmem>>, vector<2x1x256xf32>,
    %c1_13 = arith.constant 1 : index
    %23 = memref.load %arg0[%c1_13] : memref<17xf32, #tpu.memory_space<smem>>
    %24 = vector.broadcast %23 : f32 to vector<2x1x256xf32>
    %25 = arith.mulf %0, %24 : vector<2x1x256xf32>
    %c3_14 = arith.constant 3 : index
    %26 = memref.load %arg0[%c3_14] : memref<17xf32, #tpu.memory_space<smem>>
    %27 = vector.broadcast %26 : f32 to vector<2x1x256xf32>
    %28 = arith.mulf %1, %27 : vector<2x1x256xf32>
    %29 = arith.addf %25, %28 : vector<2x1x256xf32>
    %c5 = arith.constant 5 : index
    %30 = memref.load %arg0[%c5] : memref<17xf32, #tpu.memory_space<smem>>
    %31 = vector.broadcast %30 : f32 to vector<2x1x256xf32>
    %32 = arith.mulf %2, %31 : vector<2x1x256xf32>
    %33 = arith.addf %29, %32 : vector<2x1x256xf32>
    %c7 = arith.constant 7 : index
    %34 = memref.load %arg0[%c7] : memref<17xf32, #tpu.memory_space<smem>>
    %35 = vector.broadcast %34 : f32 to vector<2x1x256xf32>
    %36 = arith.mulf %3, %35 : vector<2x1x256xf32>
    %37 = arith.addf %33, %36 : vector<2x1x256xf32>
    %c9 = arith.constant 9 : index
    %38 = memref.load %arg0[%c9] : memref<17xf32, #tpu.memory_space<smem>>
    %39 = vector.broadcast %38 : f32 to vector<2x1x256xf32>
    %40 = arith.addf %37, %39 : vector<2x1x256xf32>
    %c0_15 = arith.constant 0 : index
    %c1_16 = arith.constant 1 : index
    %c0_17 = arith.constant 0 : index
    %41 = vector.load %arg2[%c0_15, %c1_16, %c0_17] : memref<2x2x256xf32, #tpu.memory_space<vmem>>, vector<2x1x256xf32>
    tpu.vector_store %arg2[%c0_15, %c1_16, %c0_17], %40 {strides = array<i32>} : memref<2x2x256xf32, #tpu.memory_space<vmem>>, vector<2x1x256xf32>,
    %c10 = arith.constant 10 : index
    %42 = memref.load %arg0[%c10] : memref<17xf32, #tpu.memory_space<smem>>
    %43 = vector.broadcast %42 : f32 to vector<2x1x256xf32>
    %44 = arith.mulf %0, %43 : vector<2x1x256xf32>
    %c12 = arith.constant 12 : index
    %45 = memref.load %arg0[%c12] : memref<17xf32, #tpu.memory_space<smem>>
    %46 = vector.broadcast %45 : f32 to vector<2x1x256xf32>
    %47 = arith.mulf %1, %46 : vector<2x1x256xf32>
    %48 = arith.addf %44, %47 : vector<2x1x256xf32>
    %c0_18 = arith.constant 0 : index
    %c0_19 = arith.constant 0 : index
    %c0_20 = arith.constant 0 : index
    %49 = vector.load %arg3[%c0_18, %c0_19, %c0_20] : memref<2x2x256xf32, #tpu.memory_space<vmem>>, vector<2x1x256xf32>
    tpu.vector_store %arg3[%c0_18, %c0_19, %c0_20], %48 {strides = array<i32>} : memref<2x2x256xf32, #tpu.memory_space<vmem>>, vector<2x1x256xf32>,
    %c11 = arith.constant 11 : index
    %50 = memref.load %arg0[%c11] : memref<17xf32, #tpu.memory_space<smem>>
    %51 = vector.broadcast %50 : f32 to vector<2x1x256xf32>
    %52 = arith.mulf %0, %51 : vector<2x1x256xf32>
    %c13 = arith.constant 13 : index
    %53 = memref.load %arg0[%c13] : memref<17xf32, #tpu.memory_space<smem>>
    %54 = vector.broadcast %53 : f32 to vector<2x1x256xf32>
    %55 = arith.mulf %1, %54 : vector<2x1x256xf32>
    %56 = arith.addf %52, %55 : vector<2x1x256xf32>
    %c0_21 = arith.constant 0 : index
    %c1_22 = arith.constant 1 : index
    %c0_23 = arith.constant 0 : index
    %57 = vector.load %arg3[%c0_21, %c1_22, %c0_23] : memref<2x2x256xf32, #tpu.memory_space<vmem>>, vector<2x1x256xf32>
    tpu.vector_store %arg3[%c0_21, %c1_22, %c0_23], %56 {strides = array<i32>} : memref<2x2x256xf32, #tpu.memory_space<vmem>>, vector<2x1x256xf32>,
    %c14 = arith.constant 14 : index
    %58 = memref.load %arg0[%c14] : memref<17xf32, #tpu.memory_space<smem>>
    %59 = vector.broadcast %58 : f32 to vector<2x1x256xf32>
    %60 = arith.mulf %2, %59 : vector<2x1x256xf32>
    %c15 = arith.constant 15 : index
    %61 = memref.load %arg0[%c15] : memref<17xf32, #tpu.memory_space<smem>>
    %62 = vector.broadcast %61 : f32 to vector<2x1x256xf32>
    %63 = arith.mulf %3, %62 : vector<2x1x256xf32>
    %64 = arith.addf %60, %63 : vector<2x1x256xf32>
    %c16 = arith.constant 16 : index
    %65 = memref.load %arg0[%c16] : memref<17xf32, #tpu.memory_space<smem>>
    %66 = vector.broadcast %65 : f32 to vector<2x1x256xf32>
    %67 = arith.addf %64, %66 : vector<2x1x256xf32>
    %cst = arith.constant 0.000000e+00 : f32
    %68 = vector.broadcast %cst : f32 to vector<2x1x256xf32>
    %69 = arith.maximumf %67, %68 : vector<2x1x256xf32>
    %c0_24 = arith.constant 0 : index
    %c0_25 = arith.constant 0 : index
    %c0_26 = arith.constant 0 : index
    %70 = vector.load %arg4[%c0_24, %c0_25, %c0_26] : memref<2x1x256xf32, #tpu.memory_space<vmem>>, vector<2x1x256xf32>
    tpu.vector_store %arg4[%c0_24, %c0_25, %c0_26], %69 {strides = array<i32>} : memref<2x1x256xf32, #tpu.memory_space<vmem>>, vector<2x1x256xf32>,
    return
  }
}

module attributes {stable_mosaic.version = 11 : i64} {
  func.func @_fu_kernel(%arg0: memref<6xf32, #tpu.memory_space<smem>>, %arg1: memref<2x2x144xf32, #tpu.memory_space<vmem>>, %arg2: memref<2x2x144xf32, #tpu.memory_space<vmem>>) attributes {dimension_semantics = [], scalar_prefetch = 0 : i64, scratch_operands = 0 : i64, tpu.core_type = #tpu.core_type<tc>} {
    %c0 = arith.constant 0 : index
    %c0_0 = arith.constant 0 : index
    %c0_1 = arith.constant 0 : index
    %0 = vector.load %arg1[%c0, %c0_0, %c0_1] : memref<2x2x144xf32, #tpu.memory_space<vmem>>, vector<2x1x144xf32>
    %c0_2 = arith.constant 0 : index
    %c1 = arith.constant 1 : index
    %c0_3 = arith.constant 0 : index
    %1 = vector.load %arg1[%c0_2, %c1, %c0_3] : memref<2x2x144xf32, #tpu.memory_space<vmem>>, vector<2x1x144xf32>
    %c0_4 = arith.constant 0 : index
    %2 = memref.load %arg0[%c0_4] : memref<6xf32, #tpu.memory_space<smem>>
    %3 = vector.broadcast %2 : f32 to vector<2x1x144xf32>
    %4 = arith.mulf %0, %3 : vector<2x1x144xf32>
    %c2 = arith.constant 2 : index
    %5 = memref.load %arg0[%c2] : memref<6xf32, #tpu.memory_space<smem>>
    %6 = vector.broadcast %5 : f32 to vector<2x1x144xf32>
    %7 = arith.mulf %1, %6 : vector<2x1x144xf32>
    %8 = arith.addf %4, %7 : vector<2x1x144xf32>
    %c4 = arith.constant 4 : index
    %9 = memref.load %arg0[%c4] : memref<6xf32, #tpu.memory_space<smem>>
    %10 = vector.broadcast %9 : f32 to vector<2x1x144xf32>
    %11 = arith.addf %8, %10 : vector<2x1x144xf32>
    %cst = arith.constant 0.000000e+00 : f32
    %12 = vector.broadcast %cst : f32 to vector<2x1x144xf32>
    %13 = arith.maximumf %11, %12 : vector<2x1x144xf32>
    %c0_5 = arith.constant 0 : index
    %c0_6 = arith.constant 0 : index
    %c0_7 = arith.constant 0 : index
    %14 = vector.load %arg2[%c0_5, %c0_6, %c0_7] : memref<2x2x144xf32, #tpu.memory_space<vmem>>, vector<2x1x144xf32>
    tpu.vector_store %arg2[%c0_5, %c0_6, %c0_7], %13 {strides = array<i32>} : memref<2x2x144xf32, #tpu.memory_space<vmem>>, vector<2x1x144xf32>,
    %c1_8 = arith.constant 1 : index
    %15 = memref.load %arg0[%c1_8] : memref<6xf32, #tpu.memory_space<smem>>
    %16 = vector.broadcast %15 : f32 to vector<2x1x144xf32>
    %17 = arith.mulf %0, %16 : vector<2x1x144xf32>
    %c3 = arith.constant 3 : index
    %18 = memref.load %arg0[%c3] : memref<6xf32, #tpu.memory_space<smem>>
    %19 = vector.broadcast %18 : f32 to vector<2x1x144xf32>
    %20 = arith.mulf %1, %19 : vector<2x1x144xf32>
    %21 = arith.addf %17, %20 : vector<2x1x144xf32>
    %c5 = arith.constant 5 : index
    %22 = memref.load %arg0[%c5] : memref<6xf32, #tpu.memory_space<smem>>
    %23 = vector.broadcast %22 : f32 to vector<2x1x144xf32>
    %24 = arith.addf %21, %23 : vector<2x1x144xf32>
    %cst_9 = arith.constant 0.000000e+00 : f32
    %25 = vector.broadcast %cst_9 : f32 to vector<2x1x144xf32>
    %26 = arith.maximumf %24, %25 : vector<2x1x144xf32>
    %c0_10 = arith.constant 0 : index
    %c1_11 = arith.constant 1 : index
    %c0_12 = arith.constant 0 : index
    %27 = vector.load %arg2[%c0_10, %c1_11, %c0_12] : memref<2x2x144xf32, #tpu.memory_space<vmem>>, vector<2x1x144xf32>
    tpu.vector_store %arg2[%c0_10, %c1_11, %c0_12], %26 {strides = array<i32>} : memref<2x2x144xf32, #tpu.memory_space<vmem>>, vector<2x1x144xf32>,
    return
  }
}

module attributes {stable_mosaic.version = 11 : i64} {
  func.func @_postfft_kernel(%arg0: memref<4xf32, #tpu.memory_space<smem>>, %arg1: memref<2x1x256xf32, #tpu.memory_space<vmem>>, %arg2: memref<2x1x256xf32, #tpu.memory_space<vmem>>, %arg3: memref<2x2x256xf32, #tpu.memory_space<vmem>>, %arg4: memref<2x2x256xf32, #tpu.memory_space<vmem>>, %arg5: memref<2x4x256xf32, #tpu.memory_space<vmem>>) attributes {dimension_semantics = [], scalar_prefetch = 0 : i64, scratch_operands = 0 : i64, tpu.core_type = #tpu.core_type<tc>} {
    %c0 = arith.constant 0 : index
    %c0_0 = arith.constant 0 : index
    %c0_1 = arith.constant 0 : index
    %0 = vector.load %arg4[%c0, %c0_0, %c0_1] : memref<2x2x256xf32, #tpu.memory_space<vmem>>, vector<2x2x256xf32>
    %c0_2 = arith.constant 0 : index
    %c0_3 = arith.constant 0 : index
    %c0_4 = arith.constant 0 : index
    %1 = vector.load %arg5[%c0_2, %c0_3, %c0_4] : memref<2x4x256xf32, #tpu.memory_space<vmem>>, vector<2x2x256xf32>
    tpu.vector_store %arg5[%c0_2, %c0_3, %c0_4], %0 {strides = array<i32>} : memref<2x4x256xf32, #tpu.memory_space<vmem>>, vector<2x2x256xf32>,
    %c0_5 = arith.constant 0 : index
    %c0_6 = arith.constant 0 : index
    %c0_7 = arith.constant 0 : index
    %2 = vector.load %arg1[%c0_5, %c0_6, %c0_7] : memref<2x1x256xf32, #tpu.memory_space<vmem>>, vector<2x1x256xf32>
    %c0_8 = arith.constant 0 : index
    %c0_9 = arith.constant 0 : index
    %c0_10 = arith.constant 0 : index
    %3 = vector.load %arg2[%c0_8, %c0_9, %c0_10] : memref<2x1x256xf32, #tpu.memory_space<vmem>>, vector<2x1x256xf32>
    %4 = arith.addf %2, %3 : vector<2x1x256xf32>
    %c0_11 = arith.constant 0 : index
    %5 = memref.load %arg0[%c0_11] : memref<4xf32, #tpu.memory_space<smem>>
    %6 = vector.broadcast %5 : f32 to vector<2x1x256xf32>
    %7 = arith.mulf %4, %6 : vector<2x1x256xf32>
    %c0_12 = arith.constant 0 : index
    %c0_13 = arith.constant 0 : index
    %c0_14 = arith.constant 0 : index
    %8 = vector.load %arg3[%c0_12, %c0_13, %c0_14] : memref<2x2x256xf32, #tpu.memory_space<vmem>>, vector<2x1x256xf32>
    %9 = arith.addf %7, %8 : vector<2x1x256xf32>
    %c2 = arith.constant 2 : index
    %10 = memref.load %arg0[%c2] : memref<4xf32, #tpu.memory_space<smem>>
    %11 = vector.broadcast %10 : f32 to vector<2x1x256xf32>
    %12 = arith.addf %9, %11 : vector<2x1x256xf32>
    %c0_15 = arith.constant 0 : index
    %c2_16 = arith.constant 2 : index
    %c0_17 = arith.constant 0 : index
    %13 = vector.load %arg5[%c0_15, %c2_16, %c0_17] : memref<2x4x256xf32, #tpu.memory_space<vmem>>, vector<2x1x256xf32>
    tpu.vector_store %arg5[%c0_15, %c2_16, %c0_17], %12 {strides = array<i32>} : memref<2x4x256xf32, #tpu.memory_space<vmem>>, vector<2x1x256xf32>,
    %c1 = arith.constant 1 : index
    %14 = memref.load %arg0[%c1] : memref<4xf32, #tpu.memory_space<smem>>
    %15 = vector.broadcast %14 : f32 to vector<2x1x256xf32>
    %16 = arith.mulf %4, %15 : vector<2x1x256xf32>
    %c0_18 = arith.constant 0 : index
    %c1_19 = arith.constant 1 : index
    %c0_20 = arith.constant 0 : index
    %17 = vector.load %arg3[%c0_18, %c1_19, %c0_20] : memref<2x2x256xf32, #tpu.memory_space<vmem>>, vector<2x1x256xf32>
    %18 = arith.addf %16, %17 : vector<2x1x256xf32>
    %c3 = arith.constant 3 : index
    %19 = memref.load %arg0[%c3] : memref<4xf32, #tpu.memory_space<smem>>
    %20 = vector.broadcast %19 : f32 to vector<2x1x256xf32>
    %21 = arith.addf %18, %20 : vector<2x1x256xf32>
    %c0_21 = arith.constant 0 : index
    %c3_22 = arith.constant 3 : index
    %c0_23 = arith.constant 0 : index
    %22 = vector.load %arg5[%c0_21, %c3_22, %c0_23] : memref<2x4x256xf32, #tpu.memory_space<vmem>>, vector<2x1x256xf32>
    tpu.vector_store %arg5[%c0_21, %c3_22, %c0_23], %21 {strides = array<i32>} : memref<2x4x256xf32, #tpu.memory_space<vmem>>, vector<2x1x256xf32>,
    return
  }
}

</mosaic_0001>

<bundles_post_ra>
// kernel: ffc_bn_act_forward.3
= control target key start
LH: loop header
LB: loop body
LE: loop exit
PB: predicated region body
PF: predicated region fallthrough
CT: control target
= control target key end

     0   :  { %10 = vsyncpa [#allocation3], 0  ;;  %s403_s0 = inlined_call_operand.vmem [shape: f32[17], index: 0, kind: input, shape index: {}]   ;;  %s404_s1 = inlined_call_operand.vmem [shape: f32[2,4,256], index: 1, kind: input, shape index: {}]   ;;  %s405_s2 = inlined_call_operand.vmem [shape: f32[2,2,256], index: 2, kind: output, shape index: {0}]   ;;  %s406_s3 = inlined_call_operand.vmem [shape: f32[2,2,256], index: 3, kind: output, shape index: {1}]   ;;  %s407_s4 = inlined_call_operand.vmem [shape: f32[2,1,256], index: 4, kind: output, shape index: {2}]  }
   0x1   :  { %s17_s17 = sshll.u32 %s403_s0, 4  ;;  %s18_s17 = int_to_ptr.vmem [resolvable:$true] %s17_s17 }
   0x2   :  { %s193_s18 = scalar_lea.vmem %s18_s17, 16  ;;  %p198_p1 = scmp.lt.s32.totalorder %s18_s17, %s18_s17 }
   0x3   :  { %p194_p0 = scmp.ne.s32.totalorder %s18_s17, %s193_s18  ;;  %p199_p2 = scmp.lt.s32.totalorder %s193_s18, %s193_s18 }
   0x5   :  { %p200_p3 = por %p199_p2, %p198_p1 }
   0x7   :  { %p201_p4 = pnand %p200_p3, %p194_p0 }
   0x9   :  { %204 = shalt.err (!%p201_p4)
}
   0xa   :  { %s207_s19 = smov [#allocation2]  }
   0xb   :  { %20 = dma.vmem_to_smem %s18_s17, 16, %s207_s19, [#allocation3]  }
   0xc   :  { %205 = dma.done.wait [#allocation3], 16  }
   0xd   :  { %206 = vsyncadd [#allocation3], 4294967280 }
   0xe   :  { %26 = sfence }
   0xf   :  { %s42_s20 = sld [smem:[#allocation2]]  ;;  %s236_s21 = sld [smem:[#allocation2 + $0x2]]  ;;  %v243_v0 = vld [vmem:[%s404_s1] ss:$4 sm:$0x3]  ;;  %v68_v8 = vlaneseq }
  0x10   :  { %s171_s22 = sld [smem:[#allocation2 + $0x4]]  ;;  %s238_s23 = sld [smem:[#allocation2 + $0x6]]  ;;  %v248_v1 = vld [vmem:[%s404_s1 + $0x1] ss:$4 sm:$0x3] }
  0x11   :  { %s250_s27 = sld [smem:[#allocation2 + $0x8]]  ;;  %v255_v2 = vld [vmem:[%s404_s1 + $0x2] ss:$4 sm:$0x3]  ;;  %s272_s10 = sld [smem:[#allocation2 + $0x1]]  ;;  %vm306_vm0 = vcmp.lt.s32.totalorder %v68_v8, 256 }
  0x12   :  { %v260_v3 = vld [vmem:[%s404_s1 + $0x8] ss:$4 sm:$0x3]  ;;  %v265_v4 = vld [vmem:[%s404_s1 + $0x9] ss:$4 sm:$0x3] }
  0x13   :  { %v270_v5 = vld [vmem:[%s404_s1 + $0xa] ss:$4 sm:$0x3]  ;;  %s274_s11 = sld [smem:[#allocation2 + $0x3]]  ;;  %s276_s12 = sld [smem:[#allocation2 + $0x5]] }
  0x14   :  { %s279_s13 = sld [smem:[#allocation2 + $0x7]]  ;;  %s281_s14 = sld [smem:[#allocation2 + $0x9]]  ;;  %v291_v13 = vld [vmem:[%s404_s1 + $0x3] ss:$4 sm:$0x3] }
  0x15   :  { %v43_v6 = vstv %s42_s20  ;;  %v47_v7 = vstv %s236_s21  ;;  %s286_s15 = sld [smem:[#allocation2 + $0xa]]  ;;  %s295_s18 = sld [smem:[#allocation2 + $0xc]]  ;;  %v301_v18 = vld [vmem:[%s404_s1 + $0xb] ss:$4 sm:$0x3] }
  0x16   :  { %v44_v9 = vmul.f32 %v43_v6, %v243_v0  ;;  %v48_v10 = vmul.f32 %v248_v1, %v47_v7  ;;  %v53_v11 = vstv %s171_s22  ;;  %v59_v12 = vstv %s238_s23  ;;  %s312_s21 = sld [smem:[#allocation2 + $0xb]]  ;;  %s314_s22 = sld [smem:[#allocation2 + $0xd]] }
  0x17   :  { %v54_v14 = vmul.f32 %v255_v2, %v53_v11  ;;  %v45_v15 = vmul.f32 %v260_v3, %v43_v6  ;;  %v60_v17 = vmul.f32 %v291_v13, %v59_v12  ;;  %v49_v19 = vmul.f32 %v265_v4, %v47_v7  ;;  %s324_s1 = sld [smem:[#allocation2 + $0xe]]  ;;  %s326_s23 = sld [smem:[#allocation2 + $0xf]] }
  0x18   :  { %v50_v16 = vadd.f32 %v48_v10, %v44_v9  ;;  %v55_v20 = vmul.f32 %v270_v5, %v53_v11  ;;  %v65_v21 = vstv %s250_s27  ;;  %v61_v23 = vmul.f32 %v301_v18, %v59_v12  ;;  %s333_s0 = sld [smem:[#allocation2 + $0x10]] }
  0x19   :  { %v76_v24 = vstv %s272_s10  ;;  %v51_v26 = vadd.f32 %v49_v19, %v45_v15  ;;  %v80_v28 = vstv %s274_s11  ;;  %v86_v30 = vstv %s276_s12 }
  0x1a   :  { %v56_v25 = vadd.f32 %v54_v14, %v50_v16  ;;  %v77_v27 = vmul.f32 %v76_v24, %v243_v0  ;;  %v81_v29 = vmul.f32 %v248_v1, %v80_v28  ;;  %v92_v31 = vstv %s279_s13 }
  0x1b   :  { %v98_v32 = vstv %s281_s14  ;;  %v57_v34 = vadd.f32 %v55_v20, %v51_v26  ;;  %v87_v35 = vmul.f32 %v255_v2, %v86_v30  ;;  %v93_v36 = vmul.f32 %v291_v13, %v92_v31 }
  0x1c   :  { %v62_v33 = vadd.f32 %v60_v17, %v56_v25  ;;  %v83_v37 = vadd.f32 %v81_v29, %v77_v27  ;;  %v78_v38 = vmul.f32 %v260_v3, %v76_v24  ;;  %v82_v39 = vmul.f32 %v265_v4, %v80_v28 }
  0x1d   :  { %v88_v40 = vmul.f32 %v270_v5, %v86_v30  ;;  %v63_v42 = vadd.f32 %v61_v23, %v57_v34  ;;  %v94_v43 = vmul.f32 %v301_v18, %v92_v31  ;;  %v106_v44 = vstv %s286_s15 }
  0x1e   :  { %v66_v41 = vadd.f32 %v65_v21, %v62_v33  ;;  %v89_v45 = vadd.f32 %v87_v35, %v83_v37  ;;  %v84_v46 = vadd.f32 %v82_v39, %v78_v38  ;;  %v107_v47 = vmul.f32 %v106_v44, %v243_v0 }
  0x1f   :  { %v110_v48 = vstv %s295_s18  ;;  %v67_v49 = vadd.f32 %v65_v21, %v63_v42  ;;  %v108_v51 = vmul.f32 %v260_v3, %v106_v44  ;;  %v119_v55 = vstv %s312_s21 }
  0x20   :  { %72 = vst.msk [vmem:[%s405_s2] ss:$2 sm:$0x3] %vm306_vm0, %v66_v41  ;;  %v111_v50 = vmul.f32 %v248_v1, %v110_v48  ;;  %v112_v52 = vmul.f32 %v265_v4, %v110_v48  ;;  %v95_v53 = vadd.f32 %v93_v36, %v89_v45  ;;  %v90_v54 = vadd.f32 %v88_v40, %v84_v46 }
  0x21   :  { %v123_v56 = vstv %s314_s22  ;;  %174 = vst.msk [vmem:[%s405_s2 + $0x4] ss:$2 sm:$0x3] %vm306_vm0, %v67_v49  ;;  %v120_v59 = vmul.f32 %v119_v55, %v243_v0  ;;  %v121_v63 = vmul.f32 %v260_v3, %v119_v55  ;;  %v137_v7 = vstv %s326_s23 }
  0x22   :  { %v113_v57 = vadd.f32 %v111_v50, %v107_v47  ;;  %v114_v58 = vadd.f32 %v112_v52, %v108_v51  ;;  %v124_v60 = vmul.f32 %v248_v1, %v123_v56  ;;  %v99_v61 = vadd.f32 %v98_v32, %v95_v53 }
  0x23   :  { %v96_v62 = vadd.f32 %v94_v43, %v90_v54  ;;  %v125_v6 = vmul.f32 %v265_v4, %v123_v56  ;;  %v133_v1 = vstv %s324_s1  ;;  %v138_v9 = vmul.f32 %v291_v13, %v137_v7 }
  0x24   :  { %115 = vst.msk [vmem:[%s406_s3] ss:$2 sm:$0x3] %vm306_vm0, %v113_v57  ;;  %184 = vst.msk [vmem:[%s406_s3 + $0x4] ss:$2 sm:$0x3] %vm306_vm0, %v114_v58  ;;  %v126_v0 = vadd.f32 %v124_v60, %v120_v59  ;;  %v134_v8 = vmul.f32 %v255_v2, %v133_v1  ;;  %v143_v10 = vstv %s333_s0  ;;  %v135_v11 = vmul.f32 %v270_v5, %v133_v1 }
  0x25   :  { %180 = vst.msk [vmem:[%s405_s2 + $0x1] ss:$2 sm:$0x3] %vm306_vm0, %v99_v61  ;;  %v100_v3 = vadd.f32 %v98_v32, %v96_v62  ;;  %v127_v4 = vadd.f32 %v125_v6, %v121_v63  ;;  %v139_v12 = vmul.f32 %v301_v18, %v137_v7 }
  0x26   :  { %187 = vst.msk [vmem:[%s406_s3 + $0x1] ss:$2 sm:$0x3] %vm306_vm0, %v126_v0  ;;  %v140_v2 = vadd.f32 %v138_v9, %v134_v8 }
  0x27   :  { %181 = vst.msk [vmem:[%s405_s2 + $0x5] ss:$2 sm:$0x3] %vm306_vm0, %v100_v3  ;;  %188 = vst.msk [vmem:[%s406_s3 + $0x5] ss:$2 sm:$0x3] %vm306_vm0, %v127_v4  ;;  %v141_v13 = vadd.f32 %v139_v12, %v135_v11 }
  0x28   :  { %v144_v14 = vadd.f32 %v143_v10, %v140_v2 }
  0x29   :  { %v145_v15 = vadd.f32 %v143_v10, %v141_v13 }
  0x2a   :  { %v146_v16 = vmax.f32 %v144_v14, 0.0 }
  0x2b   :  { %v147_v5 = vmax.f32 %v145_v15, 0.0 }
  0x2c   :  { %148 = vst.msk [vmem:[%s407_s4] sm:$0x3] %vm306_vm0, %v146_v16 }
  0x2d   :  { %149 = vst.msk [vmem:[%s407_s4 + $0x2] sm:$0x3] %vm306_vm0, %v147_v5 }
  0x2e   :  { %162 = vsyncpa [#allocation3], 1 }

// kernel: reverse.1
= control target key start
LH: loop header
LB: loop body
LE: loop exit
PB: predicated region body
PF: predicated region fallthrough
CT: control target
= control target key end

     0   :  { %v40_v2 = vld [vmem:[#allocation0 + $0x7] ss:$-1 sm:$0xff]  ;;  %v47_v3 = vlaneseq  ;;  %v54_v5 = vld [vmem:[#allocation0 + $0x17] ss:$-1 sm:$0xff]  ;;  %s135_s0 = inlined_call_operand.vmem [shape: f32[2,1,16,7], index: 0, kind: input, shape index: {}]   ;;  %s136_s1 = inlined_call_operand.vmem [shape: f32[2,1,16,7], index: 1, kind: output, shape index: {}]  }
   0x1   :  { %v32_v0 = vld [vmem:[%s135_s0] sm:$0xff]  ;;  %v34_v1 = vld [vmem:[%s135_s0 + $0x8] sm:$0xff]  ;;  %v41_v4 = vrot.slane %v40_v2, 1  ;;  %v55_v6 = vrot.slane %v54_v5, 1 }
   0x2   :  { %33 = vst [vmem:[#allocation0 + $0x8] sm:$0xff] %v32_v0  ;;  %35 = vst [vmem:[#allocation0 + $0x18] sm:$0xff] %v34_v1  ;;  %v48_v7 = vshrl.u32 %v47_v3, 7 }
   0x3   :  { %42 = vst [vmem:[#allocation1] sm:$0xff] %v41_v4  ;;  %56 = vst [vmem:[#allocation1 + $0x8] sm:$0xff] %v55_v6 }
   0x4   :  { %vm49_vm0 = vcmp.lt.s32.totalorder %v48_v7, 7 }
   0x9   :  { %v45_v8 = vld [vmem:[#allocation0 + $0xf] ss:$-1 sm:$0xff]  ;;  %v59_v9 = vld [vmem:[#allocation0 + $0x1f] ss:$-1 sm:$0xff] }
   0xa   :  { %v46_v10 = vrot.slane %v45_v8, 1  ;;  %v60_v11 = vrot.slane %v59_v9, 1 }
   0xc   :  { %50 = vst.msk [vmem:[#allocation1] sm:$0xff] %vm49_vm0, %v46_v10  ;;  %64 = vst.msk [vmem:[#allocation1 + $0x8] sm:$0xff] %vm49_vm0, %v60_v11 }
  0x13   :  { %v94_v12 = vld [vmem:[#allocation1] sm:$0xff]  ;;  %v96_v13 = vld [vmem:[#allocation1 + $0x8] sm:$0xff] }
  0x14   :  { %95 = vst [vmem:[%s136_s1] sm:$0xff] %v94_v12  ;;  %97 = vst [vmem:[%s136_s1 + $0x8] sm:$0xff] %v96_v13 }

// kernel: ffc_bn_act_forward.4
= control target key start
LH: loop header
LB: loop body
LE: loop exit
PB: predicated region body
PF: predicated region fallthrough
CT: control target
= control target key end

     0   :  { %7 = vsyncpa [#allocation3], 0  ;;  %s148_s0 = inlined_call_operand.vmem [shape: f32[6], index: 0, kind: input, shape index: {}]   ;;  %s149_s1 = inlined_call_operand.vmem [shape: f32[2,2,144], index: 1, kind: input, shape index: {}]   ;;  %s150_s2 = inlined_call_operand.vmem [shape: f32[2,2,144], index: 2, kind: output, shape index: {}]  }
   0x1   :  { %s14_s11 = sshll.u32 %s148_s0, 4  ;;  %s15_s11 = int_to_ptr.vmem [resolvable:$true] %s14_s11 }
   0x2   :  { %s91_s12 = scalar_lea.vmem %s15_s11, 16  ;;  %p96_p1 = scmp.lt.s32.totalorder %s15_s11, %s15_s11 }
   0x3   :  { %p92_p0 = scmp.ne.s32.totalorder %s15_s11, %s91_s12  ;;  %p97_p2 = scmp.lt.s32.totalorder %s91_s12, %s91_s12 }
   0x5   :  { %p98_p3 = por %p97_p2, %p96_p1 }
   0x7   :  { %p99_p4 = pnand %p98_p3, %p92_p0 }
   0x9   :  { %102 = shalt.err (!%p99_p4)
}
   0xa   :  { %s105_s13 = smov [#allocation2]  }
   0xb   :  { %17 = dma.vmem_to_smem %s15_s11, 16, %s105_s13, [#allocation3]  }
   0xc   :  { %103 = dma.done.wait [#allocation3], 16  }
   0xd   :  { %104 = vsyncadd [#allocation3], 4294967280 }
   0xe   :  { %23 = sfence }
   0xf   :  { %s31_s14 = sld [smem:[#allocation2]]  ;;  %s82_s15 = sld [smem:[#allocation2 + $0x2]]  ;;  %v24_v0 = vld [vmem:[%s149_s1] ss:$2 sm:$0x3]  ;;  %v47_v10 = vlaneseq }
  0x10   :  { %s83_s16 = sld [smem:[#allocation2 + $0x4]]  ;;  %s85_s0 = sld [smem:[#allocation2 + $0x1]]  ;;  %v80_v1 = vld [vmem:[%s149_s1 + $0x1] ss:$2 sm:$0x3] }
  0x11   :  { %s86_s19 = sld [smem:[#allocation2 + $0x3]]  ;;  %s87_s20 = sld [smem:[#allocation2 + $0x5]]  ;;  %v79_v2 = vld [vmem:[%s149_s1 + $0x4] ss:$2 sm:$0x3]  ;;  %vm49_vm0 = vcmp.lt.s32.totalorder %v47_v10, 144 }
  0x12   :  { %v81_v3 = vld [vmem:[%s149_s1 + $0x5] ss:$2 sm:$0x3] }
  0x15   :  { %v32_v4 = vstv %s31_s14  ;;  %v36_v5 = vstv %s82_s15 }
  0x16   :  { %v33_v6 = vmul.f32 %v32_v4, %v24_v0  ;;  %v37_v7 = vmul.f32 %v80_v1, %v36_v5  ;;  %v34_v8 = vmul.f32 %v79_v2, %v32_v4  ;;  %v42_v9 = vstv %s83_s16 }
  0x17   :  { %v38_v11 = vmul.f32 %v81_v3, %v36_v5  ;;  %v55_v12 = vstv %s85_s0  ;;  %v59_v15 = vstv %s86_s19  ;;  %v65_v21 = vstv %s87_s20 }
  0x18   :  { %v39_v13 = vadd.f32 %v37_v7, %v33_v6  ;;  %v56_v14 = vmul.f32 %v55_v12, %v24_v0  ;;  %v60_v17 = vmul.f32 %v80_v1, %v59_v15  ;;  %v57_v18 = vmul.f32 %v79_v2, %v55_v12 }
  0x19   :  { %v40_v16 = vadd.f32 %v38_v11, %v34_v8  ;;  %v61_v19 = vmul.f32 %v81_v3, %v59_v15 }
  0x1a   :  { %v43_v20 = vadd.f32 %v42_v9, %v39_v13  ;;  %v62_v23 = vadd.f32 %v60_v17, %v56_v14 }
  0x1b   :  { %v44_v22 = vadd.f32 %v42_v9, %v40_v16  ;;  %v63_v24 = vadd.f32 %v61_v19, %v57_v18 }
  0x1c   :  { %v45_v25 = vmax.f32 %v43_v20, 0.0  ;;  %v66_v27 = vadd.f32 %v65_v21, %v62_v23 }
  0x1d   :  { %v46_v26 = vmax.f32 %v44_v22, 0.0  ;;  %v67_v28 = vadd.f32 %v65_v21, %v63_v24 }
  0x1e   :  { %51 = vst.msk [vmem:[%s150_s2] ss:$2 sm:$0x3] %vm49_vm0, %v45_v25  ;;  %v68_v29 = vmax.f32 %v66_v27, 0.0 }
  0x1f   :  { %84 = vst.msk [vmem:[%s150_s2 + $0x4] ss:$2 sm:$0x3] %vm49_vm0, %v46_v26  ;;  %v69_v30 = vmax.f32 %v67_v28, 0.0 }
  0x20   :  { %88 = vst.msk [vmem:[%s150_s2 + $0x1] ss:$2 sm:$0x3] %vm49_vm0, %v68_v29 }
  0x21   :  { %89 = vst.msk [vmem:[%s150_s2 + $0x5] ss:$2 sm:$0x3] %vm49_vm0, %v69_v30 }
  0x22   :  { %78 = vsyncpa [#allocation3], 1 }

// kernel: ffc_bn_act_forward.5
= control target key start
LH: loop header
LB: loop body
LE: loop exit
PB: predicated region body
PF: predicated region fallthrough
CT: control target
= control target key end

     0   :  { %10 = vsyncpa [#allocation3], 0  ;;  %s214_s0 = inlined_call_operand.vmem [shape: f32[4], index: 0, kind: input, shape index: {}]   ;;  %s215_s1 = inlined_call_operand.vmem [shape: f32[2,1,256], index: 1, kind: input, shape index: {}]   ;;  %s216_s2 = inlined_call_operand.vmem [shape: f32[2,1,256], index: 2, kind: input, shape index: {}]   ;;  %s217_s3 = inlined_call_operand.vmem [shape: f32[2,2,256], index: 3, kind: input, shape index: {}]   ;;  %s218_s4 = inlined_call_operand.vmem [shape: f32[2,2,256], index: 4, kind: input, shape index: {}]   ;;  %s219_s5 = inlined_call_operand.vmem [shape: f32[2,4,256], index: 5, kind: output, shape index: {}]  }
   0x1   :  { %s17_s20 = sshll.u32 %s214_s0, 4  ;;  %s18_s20 = int_to_ptr.vmem [resolvable:$true] %s17_s20 }
   0x2   :  { %s118_s21 = scalar_lea.vmem %s18_s20, 16  ;;  %p123_p1 = scmp.lt.s32.totalorder %s18_s20, %s18_s20 }
   0x3   :  { %p119_p0 = scmp.ne.s32.totalorder %s18_s20, %s118_s21  ;;  %p124_p2 = scmp.lt.s32.totalorder %s118_s21, %s118_s21 }
   0x5   :  { %p125_p3 = por %p124_p2, %p123_p1 }
   0x7   :  { %p126_p4 = pnand %p125_p3, %p119_p0 }
   0x9   :  { %129 = shalt.err (!%p126_p4)
}
   0xa   :  { %s132_s22 = smov [#allocation2]  }
   0xb   :  { %20 = dma.vmem_to_smem %s18_s20, 16, %s132_s22, [#allocation3]  }
   0xc   :  { %130 = dma.done.wait [#allocation3], 16  }
   0xd   :  { %131 = vsyncadd [#allocation3], 4294967280 }
   0xe   :  { %32 = sfence }
   0xf   :  { %v105_v0 = vld.sshfl [vmem:[%s218_s4] sm:$0x33 pattern:$0x76325410]  ;;  %s61_s9 = sld [smem:[#allocation2]]  ;;  %s108_s10 = sld [smem:[#allocation2 + $0x2]]  ;;  %v74_v10 = vlaneseq }
  0x10   :  { %53 = vst [vmem:[%s219_s5] sm:$0x33] %v105_v0  ;;  %v106_v1 = vld.sshfl [vmem:[%s218_s4 + $0x4] sm:$0x33 pattern:$0x76325410]  ;;  %s111_s14 = sld [smem:[#allocation2 + $0x1]] }
  0x11   :  { %54 = vst [vmem:[%s219_s5 + $0x8] sm:$0x33] %v106_v1  ;;  %v55_v2 = vld [vmem:[%s215_s1] sm:$0x3]  ;;  %v56_v4 = vld [vmem:[%s215_s1 + $0x2] sm:$0x3] }
  0x12   :  { %v57_v3 = vld [vmem:[%s216_s2] sm:$0x3]  ;;  %v58_v5 = vld [vmem:[%s216_s2 + $0x2] sm:$0x3]  ;;  %s114_s15 = sld [smem:[#allocation2 + $0x3]]  ;;  %vm76_vm0 = vcmp.lt.s32.totalorder %v74_v10, 256 }
  0x13   :  { %v59_v6 = vadd.f32 %v57_v3, %v55_v2  ;;  %v60_v7 = vadd.f32 %v58_v5, %v56_v4  ;;  %v65_v9 = vld [vmem:[%s217_s3] ss:$2 sm:$0x3]  ;;  %v107_v11 = vld [vmem:[%s217_s3 + $0x4] ss:$2 sm:$0x3] }
  0x14   :  { %v112_v16 = vld [vmem:[%s217_s3 + $0x1] ss:$2 sm:$0x3]  ;;  %v113_v20 = vld [vmem:[%s217_s3 + $0x5] ss:$2 sm:$0x3] }
  0x15   :  { %v62_v8 = vstv %s61_s9  ;;  %v71_v14 = vstv %s108_s10 }
  0x16   :  { %v63_v12 = vmul.f32 %v62_v8, %v59_v6  ;;  %v64_v13 = vmul.f32 %v62_v8, %v60_v7  ;;  %v83_v15 = vstv %s111_s14 }
  0x17   :  { %v84_v19 = vmul.f32 %v83_v15, %v59_v6  ;;  %v85_v22 = vmul.f32 %v83_v15, %v60_v7 }
  0x18   :  { %v68_v17 = vadd.f32 %v65_v9, %v63_v12  ;;  %v69_v18 = vadd.f32 %v107_v11, %v64_v13  ;;  %v93_v21 = vstv %s114_s15 }
  0x19   :  { %v90_v25 = vadd.f32 %v112_v16, %v84_v19  ;;  %v91_v26 = vadd.f32 %v113_v20, %v85_v22 }
  0x1a   :  { %v72_v23 = vadd.f32 %v71_v14, %v68_v17  ;;  %v73_v24 = vadd.f32 %v71_v14, %v69_v18 }
  0x1b   :  { %v94_v27 = vadd.f32 %v93_v21, %v90_v25  ;;  %v95_v28 = vadd.f32 %v93_v21, %v91_v26 }
  0x1c   :  { %109 = vst.msk [vmem:[%s219_s5 + $0x2] ss:$4 sm:$0x3] %vm76_vm0, %v72_v23  ;;  %110 = vst.msk [vmem:[%s219_s5 + $0xa] ss:$4 sm:$0x3] %vm76_vm0, %v73_v24 }
  0x1d   :  { %115 = vst.msk [vmem:[%s219_s5 + $0x3] ss:$4 sm:$0x3] %vm76_vm0, %v94_v27  ;;  %116 = vst.msk [vmem:[%s219_s5 + $0xb] ss:$4 sm:$0x3] %vm76_vm0, %v95_v28 }
  0x1e   :  { %104 = vsyncpa [#allocation3], 1 }

</bundles_post_ra>
